<compile_context>
chip_gen: v7x
topology: tpu7x:2x2x1
jax: 0.10.0
libtpu: 0.0.40
codegen_flags: <defaults>
</compile_context>

<pallas_src>
import functools
import math

import jax
import jax.numpy as jnp
from jax.experimental import pallas as pl
from jax.experimental.pallas import tpu as pltpu


# ---------------------------------------------------------------------------
# Per-generation tile / VMEM presets (keyed off physical VMEM capacity).
# ---------------------------------------------------------------------------
@functools.lru_cache(maxsize=None)
def _vmem_capacity_bytes():
    try:
        return int(pltpu.get_tpu_info().vmem_capacity_bytes)
    except Exception:
        return 64 << 20                       # conservative (v7x-class) fallback


@functools.lru_cache(maxsize=None)
def _matrix_config():
    """(tm, tn, tk, vmem_limit) targets for the (M, N) matrix path."""
    if _vmem_capacity_bytes() >= (96 << 20):  # v5e / v6e: 128 MiB physical VMEM
        return 512, 1024, 2048, 100 << 20
    return 256, 512, 1024, 48 << 20           # v7x: 64 MiB physical VMEM


@functools.lru_cache(maxsize=None)
def _rows_config():
    """(per-input block bytes, vmem_limit) for the row-wise path."""
    if _vmem_capacity_bytes() >= (96 << 20):
        return 4 << 20, 100 << 20
    return 2 << 20, 48 << 20


def _mxu_dtype(dt):
    """Operand dtype fed to the MXU: bf16 / 8-bit pass through, wider -> bf16."""
    dt = jnp.dtype(dt)
    if dt == jnp.bfloat16 or dt.itemsize == 1:
        return dt
    return jnp.bfloat16


def _row_major_strides(dims):
    s, acc = [], 1
    for d in reversed(dims):
        s.append(acc)
        acc *= int(d)
    return tuple(reversed(s))


# ---------------------------------------------------------------------------
# Matrix (outer-product broadcast) path: S[i, j] = cos(x[i], y[j]) / temp
# ---------------------------------------------------------------------------
def _cos_matrix_kernel_single(x_ref, yt_ref, ix_ref, iy_ref, o_ref, *, inv_cap):
    # Full-H blocks: one MXU contraction, scale with precomputed inverse norms.
    dot = jnp.dot(x_ref[...], yt_ref[...], preferred_element_type=jnp.float32)
    scale = jnp.minimum(ix_ref[...] * iy_ref[...], inv_cap)   # == invT/max(a*b,eps)
    o_ref[...] = (dot * scale).astype(o_ref.dtype)


def _cos_matrix_kernel_ktiled(x_ref, yt_ref, ix_ref, iy_ref, o_ref, acc_ref, *,
                              inv_cap):
    k = pl.program_id(2)

    @pl.when(k == 0)
    def _init():
        acc_ref[...] = jnp.zeros_like(acc_ref)

    acc_ref[...] += jnp.dot(x_ref[...], yt_ref[...],
                            preferred_element_type=jnp.float32)

    @pl.when(k == pl.num_programs(2) - 1)
    def _finalize():
        scale = jnp.minimum(ix_ref[...] * iy_ref[...], inv_cap)
        o_ref[...] = (acc_ref[...] * scale).astype(o_ref.dtype)


def _cos_matrix(xm, yn, temp, eps, out_dtype, *, tm=None, tn=None, tk=None):
    M, H = xm.shape
    N, _ = yn.shape
    tm_t, tn_t, tk_t, vmem_limit = _matrix_config()

    tm = tm if tm is not None else (M if M <= tm_t else tm_t)
    tn = tn if tn is not None else (N if N <= tn_t else tn_t)
    if tk is None:
        if H <= tk_t:
            tk = H
        else:
            # Smallest 128-multiple tile that keeps the same number of K steps
            # (minimizes zero padding).
            nk_est = pl.cdiv(H, tk_t)
            tk = min(tk_t, ((pl.cdiv(H, nk_est) + 127) // 128) * 128)

    inv_temp = 1.0 / float(temp)
    inv_cap = inv_temp / float(eps)

    # Inverse norms once per row (plain XLA prologue; O((M+N)*H), f32 precision).
    x32 = xm.astype(jnp.float32)
    y32 = yn.astype(jnp.float32)
    inv_x = jax.lax.rsqrt(jnp.sum(x32 * x32, axis=-1, keepdims=True)) * inv_temp  # (M,1)
    inv_y = jax.lax.rsqrt(jnp.sum(y32 * y32, axis=-1))[None, :]                    # (1,N)

    # bf16 MXU operands; y's transpose rides the same cast pass (one HBM copy).
    mdt = _mxu_dtype(jnp.promote_types(xm.dtype, yn.dtype))
    xq = xm.astype(mdt)
    ytq = yn.astype(mdt).T                                                          # (H,N)

    nk = pl.cdiv(H, tk)
    h_pad = nk * tk
    if h_pad != H:
        # Zero-pad K so partial tail blocks never feed garbage into the MXU acc.
        xq = jnp.pad(xq, ((0, 0), (0, h_pad - H)))
        ytq = jnp.pad(ytq, ((0, h_pad - H), (0, 0)))

    if nk == 1:
        grid = (pl.cdiv(M, tm), pl.cdiv(N, tn))
        in_specs = [
            pl.BlockSpec((tm, h_pad), lambda i, j: (i, 0)),
            pl.BlockSpec((h_pad, tn), lambda i, j: (0, j)),
            pl.BlockSpec((tm, 1), lambda i, j: (i, 0)),
            pl.BlockSpec((1, tn), lambda i, j: (0, j)),
        ]
        out_specs = pl.BlockSpec((tm, tn), lambda i, j: (i, j))
        kernel = functools.partial(_cos_matrix_kernel_single, inv_cap=inv_cap)
        scratch = []
        dims = ("parallel", "parallel")
    else:
        grid = (pl.cdiv(M, tm), pl.cdiv(N, tn), nk)
        in_specs = [
            pl.BlockSpec((tm, tk), lambda i, j, k: (i, k)),
            pl.BlockSpec((tk, tn), lambda i, j, k: (k, j)),
            pl.BlockSpec((tm, 1), lambda i, j, k: (i, 0)),
            pl.BlockSpec((1, tn), lambda i, j, k: (0, j)),
        ]
        out_specs = pl.BlockSpec((tm, tn), lambda i, j, k: (i, j))
        kernel = functools.partial(_cos_matrix_kernel_ktiled, inv_cap=inv_cap)
        scratch = [pltpu.VMEM((tm, tn), jnp.float32)]
        dims = ("parallel", "parallel", "arbitrary")

    return pl.pallas_call(
        kernel,
        out_shape=jax.ShapeDtypeStruct((M, N), out_dtype),
        grid_spec=pltpu.PrefetchScalarGridSpec(
            num_scalar_prefetch=0,
            grid=grid,
            in_specs=in_specs,
            out_specs=out_specs,
            scratch_shapes=scratch,
        ),
        compiler_params=pltpu.CompilerParams(
            dimension_semantics=dims,
            vmem_limit_bytes=vmem_limit,
        ),
    )(xq, ytq, inv_x, inv_y)


# ---------------------------------------------------------------------------
# General / elementwise path: per-row cosine, leading broadcast dims handled by
# the grid (never materialized in HBM).
# ---------------------------------------------------------------------------
def _cos_rows_kernel(x_ref, y_ref, o_ref, *, inv_temp, inv_cap):
    x = x_ref[...].astype(jnp.float32)          # (1, TR, H)
    y = y_ref[...].astype(jnp.float32)
    dot = jnp.sum(x * y, axis=-1, keepdims=True)
    inv_nx = jax.lax.rsqrt(jnp.sum(x * x, axis=-1, keepdims=True))
    inv_ny = jax.lax.rsqrt(jnp.sum(y * y, axis=-1, keepdims=True))
    scale = jnp.minimum(inv_nx * inv_ny * inv_temp, inv_cap)
    # TODO(synk): (..., 1) output lowers to masked per-row stores; a lane-dense
    # repack would help when H is tiny, but input reads dominate this path.
    o_ref[...] = (dot * scale).astype(o_ref.dtype)


def _cos_rows(x_r, y_r, x_lead, y_lead, lead, temp, eps, out_dtype):
    Lx, T, H = x_r.shape
    nL = len(lead)
    Lo = math.prod(lead)
    block_bytes, vmem_limit = _rows_config()

    itemsize = max(jnp.dtype(x_r.dtype).itemsize, jnp.dtype(y_r.dtype).itemsize)
    rows = block_bytes // max(1, itemsize * H)
    rows = max(8, min(int(rows), 16384))
    tr = T if T <= rows else (rows // 8) * 8
    # TODO(synk): extremely large H (>~256K f32) would also need K-tiling here.

    x_str = _row_major_strides(x_lead)
    y_str = _row_major_strides(y_lead)
    o_str = _row_major_strides(lead)

    def x_map(*idx):
        flat = 0
        for d in range(nL):
            if x_lead[d] > 1:
                flat = flat + idx[d] * x_str[d]
        return (flat, idx[nL], 0)

    def y_map(*idx):
        flat = 0
        for d in range(nL):
            if y_lead[d] > 1:
                flat = flat + idx[d] * y_str[d]
        return (flat, idx[nL], 0)

    def o_map(*idx):
        flat = 0
        for d in range(nL):
            flat = flat + idx[d] * o_str[d]
        return (flat, idx[nL], 0)

    grid = tuple(int(d) for d in lead) + (pl.cdiv(T, tr),)
    kernel = functools.partial(_cos_rows_kernel,
                               inv_temp=1.0 / float(temp),
                               inv_cap=(1.0 / float(temp)) / float(eps))
    return pl.pallas_call(
        kernel,
        out_shape=jax.ShapeDtypeStruct((Lo, T, 1), out_dtype),
        grid_spec=pltpu.PrefetchScalarGridSpec(
            num_scalar_prefetch=0,
            grid=grid,
            in_specs=[
                pl.BlockSpec((1, tr, H), x_map),
                pl.BlockSpec((1, tr, H), y_map),
            ],
            out_specs=pl.BlockSpec((1, tr, 1), o_map),
        ),
        compiler_params=pltpu.CompilerParams(
            dimension_semantics=("parallel",) * (nL + 1),
            vmem_limit_bytes=vmem_limit,
        ),
    )(x_r, y_r)


# ---------------------------------------------------------------------------
# Public wrapper (matches PyTorch `Similarity.forward`)
# ---------------------------------------------------------------------------
def similarity(x, y, temp, *, eps=1e-8, out_dtype=None):
    """cosine_similarity(x, y, dim=-1) / temp with full broadcasting."""
    x = jnp.asarray(x)
    y = jnp.asarray(y)
    if not jnp.issubdtype(x.dtype, jnp.floating):
        x = x.astype(jnp.float32)
    if not jnp.issubdtype(y.dtype, jnp.floating):
        y = y.astype(jnp.float32)
    if x.shape[-1] != y.shape[-1]:
        raise ValueError("last dims must match for CosineSimilarity(dim=-1)")
    H = x.shape[-1]
    bx, by = x.shape[:-1], y.shape[:-1]
    batch_shape = tuple(jnp.broadcast_shapes(bx, by))
    r = len(batch_shape)
    bx_al = (1,) * (r - len(bx)) + tuple(bx)
    by_al = (1,) * (r - len(by)) + tuple(by)
    if out_dtype is None:
        out_dtype = jnp.promote_types(x.dtype, y.dtype)

    # ---- pure outer-product broadcast: no axis where both sizes are > 1 ----
    if all(min(a, b) == 1 for a, b in zip(bx_al, by_al)):
        M = math.prod(bx_al)
        N = math.prod(by_al)
        s = _cos_matrix(x.reshape(M, H), y.reshape(N, H), temp, eps, out_dtype)
        s = s.reshape(bx_al + by_al)
        if r:
            perm = []
            for i in range(r):
                perm += [i, r + i]
            s = s.transpose(perm)
        return s.reshape(batch_shape)

    # ---- general path: trailing matched dims row-tiled, leading dims on grid ----
    nL = r
    while nL > 0 and bx_al[nL - 1] == by_al[nL - 1]:
        nL -= 1
    if nL > 0 and math.prod(batch_shape[nL:]) < 8:
        # TODO(synk): broadcast along the innermost batch dims leaves tiny row
        # tiles; materialize the broadcast instead (rare; correctness first).
        x = jnp.broadcast_to(x, batch_shape + (H,))
        y = jnp.broadcast_to(y, batch_shape + (H,))
        bx_al = by_al = batch_shape
        nL = 0

    lead = tuple(batch_shape[:nL])
    prodT = math.prod(batch_shape[nL:])
    x_lead = tuple(bx_al[:nL])
    y_lead = tuple(by_al[:nL])
    x_r = x.reshape((math.prod(x_lead), prodT, H))
    y_r = y.reshape((math.prod(y_lead), prodT, H))
    out = _cos_rows(x_r, y_r, x_lead, y_lead, lead, temp, eps, out_dtype)
    return out.reshape(batch_shape)


# ---------------------------------------------------------------------------
# Self-test
# ---------------------------------------------------------------------------
if __name__ == "__main__":
    key = jax.random.PRNGKey(0)
    k1, k2, k3, k4, k5, k6 = jax.random.split(key, 6)
    temp = 0.05
    eps = 1e-8

    def ref_sim(a, b):
        a32 = a.astype(jnp.float32)
        b32 = b.astype(jnp.float32)
        dot = jnp.sum(a32 * b32, -1)
        na = jnp.sqrt(jnp.sum(a32 * a32, -1))
        nb = jnp.sqrt(jnp.sum(b32 * b32, -1))
        return dot / jnp.maximum(na * nb, eps) / temp

    # 1) SimCSE outer-product broadcast: (B,1,H) x (1,B,H) -> (B,B)  [matrix path]
    B, H = 8, 32
    x = jax.random.normal(k1, (B, 1, H), dtype=jnp.float32)
    y = jax.random.normal(k2, (1, B, H), dtype=jnp.float32)
    out = jax.block_until_ready(similarity(x, y, temp))
    ref = ref_sim(jnp.broadcast_to(x, (B, B, H)), jnp.broadcast_to(y, (B, B, H)))
    assert out.shape == (B, B), out.shape
    # tolerance covers the bf16 MXU contraction
    assert jnp.allclose(out, ref, atol=1e-1, rtol=2e-2), float(
        jnp.max(jnp.abs(out - ref)))

    # 2) K-tiled accumulator path of the matrix kernel (forced small tiles).
    M, N, Hk = 20, 24, 200
    xm = jax.random.normal(k3, (M, Hk), dtype=jnp.float32)
    yn = jax.random.normal(k4, (N, Hk), dtype=jnp.float32)
    out2 = jax.block_until_ready(
        _cos_matrix(xm, yn, temp, eps, jnp.float32, tm=8, tk=128))
    ref2 = ref_sim(xm[:, None, :], yn[None, :, :])
    assert out2.shape == (M, N), out2.shape
    assert jnp.allclose(out2, ref2, atol=1e-1, rtol=2e-2), float(
        jnp.max(jnp.abs(out2 - ref2)))

    # 3) Leading-dim broadcast without materialization: (2,B,H) x (B,H) -> (2,B)
    a = jax.random.normal(k5, (2, B, H), dtype=jnp.float32)
    b = jax.random.normal(k6, (B, H), dtype=jnp.float32)
    out3 = jax.block_until_ready(similarity(a, b, temp))
    ref3 = ref_sim(a, jnp.broadcast_to(b, (2, B, H)))
    assert out3.shape == (2, B), out3.shape
    assert jnp.allclose(out3, ref3, atol=1e-3, rtol=1e-3), float(
        jnp.max(jnp.abs(out3 - ref3)))

    # 4) Matched shapes (pure elementwise): (3,4,H) x (3,4,H) -> (3,4)
    c = jax.random.normal(k1, (3, 4, H), dtype=jnp.float32)
    d = jax.random.normal(k2, (3, 4, H), dtype=jnp.float32)
    out4 = jax.block_until_ready(similarity(c, d, temp))
    ref4 = ref_sim(c, d)
    assert out4.shape == (3, 4), out4.shape
    assert jnp.allclose(out4, ref4, atol=1e-3, rtol=1e-3), float(
        jnp.max(jnp.abs(out4 - ref4)))

    print("KERNEL_OK")
</pallas_src>

<mosaic_0001>
module attributes {stable_mosaic.version = 11 : i64} {
  func.func @_cos_matrix_kernel_single(%arg0: i32, %arg1: i32, %arg2: memref<8x32xbf16, #tpu.memory_space<vmem>>, %arg3: memref<32x8xbf16, #tpu.memory_space<vmem>>, %arg4: memref<8x1xf32, #tpu.memory_space<vmem>>, %arg5: memref<1x8xf32, #tpu.memory_space<vmem>>, %arg6: memref<8x8xf32, #tpu.memory_space<vmem>>) attributes {dimension_semantics = [#tpu.dimension_semantics<parallel>, #tpu.dimension_semantics<parallel>], iteration_bounds = array<i64: 1, 1>, scalar_prefetch = 0 : i64, scratch_operands = 0 : i64, tpu.core_type = #tpu.core_type<tc>, window_params = [{transform_indices = @transform_0, window_bounds = array<i64: 8, 32>}, {transform_indices = @transform_1, window_bounds = array<i64: 32, 8>}, {transform_indices = @transform_2, window_bounds = array<i64: 8, 1>}, {transform_indices = @transform_3, window_bounds = array<i64: 1, 8>}, {transform_indices = @transform_4, window_bounds = array<i64: 8, 8>}]} {
    %c0 = arith.constant 0 : index
    %c0_0 = arith.constant 0 : index
    %0 = vector.load %arg2[%c0, %c0_0] : memref<8x32xbf16, #tpu.memory_space<vmem>>, vector<8x32xbf16>
    %c0_1 = arith.constant 0 : index
    %c0_2 = arith.constant 0 : index
    %1 = vector.load %arg3[%c0_1, %c0_2] : memref<32x8xbf16, #tpu.memory_space<vmem>>, vector<32x8xbf16>
    %cst = arith.constant dense<0.000000e+00> : vector<8x8xf32>
    %2 = tpu.matmul %0, %1, %cst {dimension_numbers = #tpu.dot_dimension_numbers<[1], [0], [0], [1], [0, 0, 1, 1], [], []>} : vector<8x32xbf16>, vector<32x8xbf16>, vector<8x8xf32> -> vector<8x8xf32>
    %c0_3 = arith.constant 0 : index
    %c0_4 = arith.constant 0 : index
    %3 = vector.load %arg4[%c0_3, %c0_4] : memref<8x1xf32, #tpu.memory_space<vmem>>, vector<8x1xf32>
    %c0_5 = arith.constant 0 : index
    %c0_6 = arith.constant 0 : index
    %4 = vector.load %arg5[%c0_5, %c0_6] : memref<1x8xf32, #tpu.memory_space<vmem>>, vector<1x8xf32>
    %5 = vector.broadcast %3 : vector<8x1xf32> to vector<8x8xf32>
    %6 = vector.broadcast %4 : vector<1x8xf32> to vector<8x8xf32>
    %7 = arith.mulf %5, %6 : vector<8x8xf32>
    %cst_7 = arith.constant 2.000000e+09 : f32
    %8 = vector.broadcast %cst_7 : f32 to vector<8x8xf32>
    %9 = arith.minimumf %7, %8 : vector<8x8xf32>
    %10 = arith.mulf %2, %9 : vector<8x8xf32>
    %c0_8 = arith.constant 0 : index
    %c0_9 = arith.constant 0 : index
    %11 = vector.load %arg6[%c0_8, %c0_9] : memref<8x8xf32, #tpu.memory_space<vmem>>, vector<8x8xf32>
    tpu.vector_store %arg6[%c0_8, %c0_9], %10 {strides = array<i32>} : memref<8x8xf32, #tpu.memory_space<vmem>>, vector<8x8xf32>,
    return
  }
  func.func @transform_0(%arg0: i32, %arg1: i32) -> (i32, i32) {
    %c0_i32 = arith.constant 0 : i32
    %c0_i32_0 = arith.constant 0 : i32
    return %arg0, %c0_i32 : i32, i32
  }
  func.func @transform_1(%arg0: i32, %arg1: i32) -> (i32, i32) {
    %c0_i32 = arith.constant 0 : i32
    %c0_i32_0 = arith.constant 0 : i32
    return %c0_i32, %arg1 : i32, i32
  }
  func.func @transform_2(%arg0: i32, %arg1: i32) -> (i32, i32) {
    %c0_i32 = arith.constant 0 : i32
    %c0_i32_0 = arith.constant 0 : i32
    return %arg0, %c0_i32 : i32, i32
  }
  func.func @transform_3(%arg0: i32, %arg1: i32) -> (i32, i32) {
    %c0_i32 = arith.constant 0 : i32
    %c0_i32_0 = arith.constant 0 : i32
    return %c0_i32, %arg1 : i32, i32
  }
  func.func @transform_4(%arg0: i32, %arg1: i32) -> (i32, i32) {
    %c0_i32 = arith.constant 0 : i32
    return %arg0, %arg1 : i32, i32
  }
}

</mosaic_0001>

<bundles_post_ra>
// kernel: tpu_custom_call.1
= control target key start
LH: loop header
LB: loop body
LE: loop exit
PB: predicated region body
PF: predicated region fallthrough
CT: control target
= control target key end

     0   :  { %v158_v1 = vmov 0.0   ;;  %vm159_vm0 = vmmov 0   ;;  %v160_v4 = vmov 0   ;;  %s214_s0 = inlined_call_operand.vmem [shape: bf16[8,32], index: 0, kind: input, shape index: {}]   ;;  %s215_s1 = inlined_call_operand.vmem [shape: bf16[32,8], index: 1, kind: input, shape index: {}]   ;;  %s216_s2 = inlined_call_operand.vmem [shape: f32[8,1], index: 2, kind: input, shape index: {}]   ;;  %s217_s3 = inlined_call_operand.vmem [shape: f32[1,8], index: 3, kind: input, shape index: {}]   ;;  %s218_s4 = inlined_call_operand.hbm [shape: f32[8,8], index: 4, kind: output, shape index: {}]  }
   0x1   :  { %v132_v0 = vld [vmem:[%s215_s1] sm:$0xff]   ;;  %119 = vmatprep.subr.bf16.mxu0 %v158_v1  ;;  %v133_v2 = vld [vmem:[%s215_s1 + $0x8] sm:$0xff]   ;;  %123 = vmatprep.mubr.msk.bf16.mxu0 %vm159_vm0, %v158_v1 }
   0x2   :  { %120 = vmatpush3.bf16.msra.mxu0 %v132_v0  ;;  %v80_v3 = vld [vmem:[%s216_s2] sm:$0xff]  ;;  %131 = vset.pattern.permute.xlu0 %v160_v4 }
   0x3   :  { %121 = vmatprep.subr.bf16.mxu0 %v158_v1 }
   0x4   :  { %9 = vsyncpa [#allocation3], 0  ;;  %84 = vperm.xlu0 %131, %v80_v3   ;;  %v19_v5 = vld [vmem:[%s214_s0] sm:$0xf]  ;;  %vm36_vm1 = vcmask 261120   ;;  %s161_s2 = smov [#allocation2]  }
   0x5   :  { %v115_v6 = vld [vmem:[%s217_s3] ss:$0 sm:$0xff]  ;;  %s104_s24 = sshll.u32 %s161_s2, 4  ;;  %vm96_vm2 = vcmask 64512   ;;  %s105_s24 = int_to_ptr.vmem [resolvable:$true] %s104_s24 }
   0x6   :  { %122 = vmatpush3.bf16.msra.mxu0 %v133_v2  ;;  %s134_s0 = scalar_lea.vmem %s105_s24, 128  ;;  %p139_p1 = scmp.lt.s32.totalorder %s105_s24, %s105_s24 }
   0x7   :  { %p135_p0 = scmp.ne.s32.totalorder %s105_s24, %s134_s0  ;;  %p140_p2 = scmp.lt.s32.totalorder %s134_s0, %s134_s0 }
   0x9   :  { %124 = vmatmul.mubr.msk.bf16.vlgmr.msra.gmra.mrb[0].mxu0 %vm36_vm1, %v19_v5  ;;  %p141_p3 = por %p140_p2, %p139_p1 }
   0xb   :  { %p142_p4 = pnand %p141_p3, %p135_p0 }
  0x83   :  { %v85_v7 = vpop.permute.xlu0 %84 }
  0x84   :  { %v93_v8 = vmul.f32 %v115_v6, %v85_v7 }
  0x86   :  { %v94_v9 = vmin.f32 %v93_v8, 2e+09 }
  0xdc   :  { %v74_v10 = vpop.f32.mrb[0].mxu0 }
  0xdd   :  { %v95_v11 = vmul.f32 %v94_v9, %v74_v10  ;;  %v125_v12 = vpop.f32.mrb[1].mxu0 }
  0xde   :  { %v77_v13 = vpop.f32.mrb[2].mxu0 }
  0xdf   :  { %v126_v14 = vpop.f32.mrb[3].mxu0  ;;  %97 = vst.msk [vmem:[#allocation2] sm:$0xff] %vm96_vm2, %v95_v11 }
  0xe0   :  { %145 = shalt.err (!%p142_p4)
}
  0xe1   :  { %s146_s26 = scalar_lea.hbm %s218_s4, 128 }
  0xe2   :  { %p147_p5 = scmp.ne.s32.totalorder %s218_s4, %s146_s26  ;;  %p150_p6 = scmp.lt.u32.totalorder %s146_s26, %s218_s4 }
  0xe4   :  { %p152_p7 = pnand %p150_p6, %p147_p5 }
  0xe6   :  { %155 = shalt.err (!%p152_p7)
}
  0xe7   :  { %107 = dma.vmem_to_hbm [thread:$0]  %s105_s24, 128, %s218_s4, [#allocation3]  }
  0xe8   :  { %156 = dma.done.wait [#allocation3], 128  }
  0xe9   :  { %157 = vsyncadd [#allocation3], 4294967168 }
  0xea   :  { %111 = vsyncpa [#allocation3], 1 }

</bundles_post_ra>
